<compile_context>
chip_gen: v7x
topology: tpu7x:2x2x1
jax: 0.10.0
libtpu: 0.0.40
codegen_flags: <defaults>
</compile_context>

<pallas_src>
import functools

import jax
import jax.numpy as jnp
from jax import lax
from jax.experimental import pallas as pl
from jax.experimental.pallas import tpu as pltpu


def _abs_pos_gather_kernel(idx_ref, e_ref, out_ref):
    """out[i, :] = E[idx[i], :] via a one-hot matmul on the MXU.

    idx_ref : VMEM (S, 1) int32   -- relative_index (clamped in the wrapper)
    e_ref   : VMEM (L, E)         -- full embedding table
    out_ref : VMEM (S, E)         -- gathered rows
    """
    L = e_ref.shape[0]
    S = out_ref.shape[0]
    idx = idx_ref[...]                                        # (S, 1) int32
    col = lax.broadcasted_iota(jnp.int32, (S, L), 1)          # col[i, j] = j
    onehot = (col == idx).astype(e_ref.dtype)                 # (S, L)
    gathered = jnp.dot(onehot, e_ref[...],
                       preferred_element_type=jnp.float32)    # (S, E) on MXU
    out_ref[...] = gathered.astype(out_ref.dtype)             # one dense store


@functools.partial(jax.jit, static_argnames=("batch_size", "seq_length"))
def absolute_position_encoding(E_absolute_position, relative_index,
                               *, batch_size, seq_length):
    L, E_dims = E_absolute_position.shape
    S = relative_index.shape[0]
    # torch expand() only broadcasts size-1 dims; it requires seq_length == L.
    assert seq_length == S == L, "expand() in the reference requires seq_length == L"

    # Clamp indices: Pallas does not bounds-check, torch index_select would raise.
    idx2d = jnp.clip(relative_index.astype(jnp.int32), 0, L - 1).reshape(S, 1)

    gathered = pl.pallas_call(
        _abs_pos_gather_kernel,
        out_shape=jax.ShapeDtypeStruct((S, E_dims), E_absolute_position.dtype),
        # Single invocation, whole arrays resident in VMEM (table + output are
        # tiny relative to VMEM on v5e/v6e/v7x) -> no pipeline step overhead,
        # no double-buffering of the constant table.
        in_specs=[
            pl.BlockSpec(memory_space=pltpu.MemorySpace.VMEM),  # relative_index
            pl.BlockSpec(memory_space=pltpu.MemorySpace.VMEM),  # embedding table
        ],
        out_specs=pl.BlockSpec(memory_space=pltpu.MemorySpace.VMEM),
    )(idx2d, E_absolute_position)

    # Batch "expand": the output is identical across batch, so broadcast once in
    # the wrapper (mirrors torch expand()) instead of writing B copies from VMEM.
    return jnp.broadcast_to(gathered, (batch_size, seq_length, E_dims))


if __name__ == "__main__":
    # Small module hyper-parameters: object_max_num=4, attributes_num=8, E_dims=128
    object_max_num = 4
    attributes_num = 8
    E_dims = 128                                  # multiple of 128 -> lane-dense output
    L = object_max_num * attributes_num           # 32

    batch_size = 2
    seq_length = L                                # expand() requires seq == L

    key = jax.random.PRNGKey(0)
    k_e, k_x = jax.random.split(key)

    # Deterministic "parameter" init (stand-in for torch.randn weight).
    E_absolute_position = jax.random.normal(k_e, (L, E_dims), dtype=jnp.float32)
    relative_index = jnp.arange(L, dtype=jnp.int32)

    # x is only consulted for its shape in the reference forward.
    x = jax.random.normal(k_x, (batch_size, seq_length, attributes_num),
                          dtype=jnp.float32)

    out = absolute_position_encoding(
        E_absolute_position, relative_index,
        batch_size=x.shape[0], seq_length=x.shape[1])
    out = jax.block_until_ready(out)

    # Pure-JAX reference: index_select + broadcast.
    ref = jnp.broadcast_to(E_absolute_position[relative_index],
                           (batch_size, seq_length, E_dims))
    assert out.shape == (batch_size, seq_length, E_dims)
    assert out.dtype == jnp.float32
    assert jnp.allclose(out, ref), "mismatch vs reference"

    print("KERNEL_OK")
</pallas_src>

<mosaic_0001>
module attributes {stable_mosaic.version = 11 : i64} {
  func.func @_abs_pos_gather_kernel(%arg0: memref<32x1xi32, #tpu.memory_space<vmem>>, %arg1: memref<32x128xf32, #tpu.memory_space<vmem>>, %arg2: memref<32x128xf32, #tpu.memory_space<vmem>>) attributes {dimension_semantics = [], scalar_prefetch = 0 : i64, scratch_operands = 0 : i64, tpu.core_type = #tpu.core_type<tc>} {
    %c0 = arith.constant 0 : index
    %c0_0 = arith.constant 0 : index
    %0 = vector.load %arg0[%c0, %c0_0] : memref<32x1xi32, #tpu.memory_space<vmem>>, vector<32x1xi32>
    %1 = tpu.iota {dimensions = array<i32: 1>} : vector<32x32xi32>
    %2 = vector.broadcast %0 : vector<32x1xi32> to vector<32x32xi32>
    %3 = arith.cmpi eq, %1, %2 : vector<32x32xi32>
    %4 = arith.extui %3 : vector<32x32xi1> to vector<32x32xi32>
    %5 = arith.sitofp %4 : vector<32x32xi32> to vector<32x32xf32>
    %c0_1 = arith.constant 0 : index
    %c0_2 = arith.constant 0 : index
    %6 = vector.load %arg1[%c0_1, %c0_2] : memref<32x128xf32, #tpu.memory_space<vmem>>, vector<32x128xf32>
    %cst = arith.constant dense<0.000000e+00> : vector<32x128xf32>
    %7 = tpu.matmul %5, %6, %cst {dimension_numbers = #tpu.dot_dimension_numbers<[1], [0], [0], [1], [0, 0, 1, 1], [], []>} : vector<32x32xf32>, vector<32x128xf32>, vector<32x128xf32> -> vector<32x128xf32>
    %c0_3 = arith.constant 0 : index
    %c0_4 = arith.constant 0 : index
    %8 = vector.load %arg2[%c0_3, %c0_4] : memref<32x128xf32, #tpu.memory_space<vmem>>, vector<32x128xf32>
    tpu.vector_store %arg2[%c0_3, %c0_4], %7 {strides = array<i32>} : memref<32x128xf32, #tpu.memory_space<vmem>>, vector<32x128xf32>,
    return
  }
}

</mosaic_0001>

<bundles_post_ra>
// kernel: absolute_position_encoding.1
= control target key start
LH: loop header
LB: loop body
LE: loop exit
PB: predicated region body
PF: predicated region fallthrough
CT: control target
= control target key end

     0   :  { %v197_v0 = vmov 0   ;;  %v15_v11 = vlaneseq  ;;  %vm45_vm0 = vcmask 261120   ;;  %v198_v15 = vmov 0.0   ;;  %s250_s0 = inlined_call_operand.vmem [shape: s32[32,1], index: 0, kind: input, shape index: {}]   ;;  %s251_s1 = inlined_call_operand.vmem [shape: f32[32,128], index: 1, kind: input, shape index: {}]   ;;  %s252_s2 = inlined_call_operand.vmem [shape: f32[32,128], index: 2, kind: output, shape index: {}]  }
   0x1   :  { %196 = vset.pattern.permute.xlu1 %v197_v0  ;;  %195 = vset.pattern.permute.xlu0 %v197_v0  ;;  %v12_v1 = vld [vmem:[%s250_s0 + $0x8] sm:$0xff]  ;;  %v11_v2 = vld [vmem:[%s250_s0] sm:$0xff]  ;;  %v14_v3 = vld [vmem:[%s250_s0 + $0x18] sm:$0xff] }
   0x2   :  { %21 = vperm.xlu1 %196, %v12_v1   ;;  %18 = vperm.xlu0 %195, %v11_v2   ;;  %v41_v4 = vld [vmem:[%s251_s1] sm:$0xff]  ;;  %v42_v5 = vld [vmem:[%s251_s1 + $0x8] sm:$0xff]  ;;  %v13_v6 = vld [vmem:[%s250_s0 + $0x10] sm:$0xff]  ;;  %v16_v12 = vand.u32 127, %v15_v11 }
   0x3   :  { %v181_v7 = vpack.c.bf16 %v42_v5, %v41_v4  ;;  %v43_v8 = vld [vmem:[%s251_s1 + $0x10] sm:$0xff]  ;;  %v44_v9 = vld [vmem:[%s251_s1 + $0x18] sm:$0xff] }
   0x4   :  { %v185_v10 = vpack.c.bf16 %v44_v9, %v43_v8 }
   0x5   :  { %182 = vmatprep.subr.bf16.mxu0 %v181_v7  ;;  %189 = vmatprep.subr.bf16.mxu1 %v181_v7 }
   0x6   :  { %27 = vperm.xlu1 %196, %v14_v3   ;;  %24 = vperm.xlu0 %195, %v13_v6  }
   0x7   :  { %184 = vmatpush3.bf16.msra.mxu0 %v181_v7  ;;  %191 = vmatpush3.bf16.msra.mxu1 %v181_v7 }
   0x8   :  { %186 = vmatprep.subr.bf16.mxu0 %v185_v10  ;;  %190 = vmatprep.subr.bf16.mxu1 %v185_v10 }
   0xb   :  { %188 = vmatpush3.bf16.msra.mxu0 %v185_v10  ;;  %192 = vmatpush3.bf16.msra.mxu1 %v185_v10 }
  0x81   :  { %v22_v13 = vpop.permute.xlu1 %21  ;;  %v19_v14 = vpop.permute.xlu0 %18 }
  0x82   :  { %vm30_vm1 = vcmp.eq.s32.totalorder %v16_v12, %v22_v13  ;;  %vm29_vm2 = vcmp.eq.s32.totalorder %v16_v12, %v19_v14 }
  0x83   :  { %v152_v16 = vsel %vm30_vm1, 1.0, %v198_v15  ;;  %v151_v17 = vsel %vm29_vm2, 1.0, %v198_v15 }
  0x84   :  { %175 = vmatprep.mubr.msk.f32.mxu0 %vm45_vm0, %v151_v17 }
  0x85   :  { %v28_v18 = vpop.permute.xlu1 %27  ;;  %176 = vmatmul.mubr.msk.f32.vlgmr.msra.gmra.mrb[0].mxu0 %vm45_vm0, %v152_v16  ;;  %v25_v19 = vpop.permute.xlu0 %24 }
  0x86   :  { %vm32_vm3 = vcmp.eq.s32.totalorder %v16_v12, %v28_v18  ;;  %vm31_vm4 = vcmp.eq.s32.totalorder %v16_v12, %v25_v19 }
  0x87   :  { %v154_v20 = vsel %vm32_vm3, 1.0, %v198_v15  ;;  %v153_v21 = vsel %vm31_vm4, 1.0, %v198_v15 }
  0x88   :  { %178 = vmatprep.mubr.msk.f32.mxu1 %vm45_vm0, %v153_v21 }
  0x89   :  { %179 = vmatmul.mubr.msk.f32.vlgmr.msra.gmra.mrb[0].mxu1 %vm45_vm0, %v154_v20 }
 0x158   :  { %v177_v22 = vpop.f32.mrb[0].mxu0 }
 0x159   :  { %144 = vst [vmem:[%s252_s2 + $0x8] sm:$0xff] %v177_v22  ;;  %v124_v23 = vpop.f32.mrb[1].mxu0 }
 0x15a   :  { %143 = vst [vmem:[%s252_s2] sm:$0xff] %v124_v23 }
 0x15c   :  { %v180_v24 = vpop.f32.mrb[0].mxu1 }
 0x15d   :  { %146 = vst [vmem:[%s252_s2 + $0x18] sm:$0xff] %v180_v24  ;;  %v134_v25 = vpop.f32.mrb[1].mxu1 }
 0x15e   :  { %145 = vst [vmem:[%s252_s2 + $0x10] sm:$0xff] %v134_v25 }

</bundles_post_ra>
